<compile_context>
chip_gen: v6e
topology: v6e:2x2x1
jax: 0.10.0
libtpu: 0.0.40
codegen_flags: <defaults>
</compile_context>

<pallas_src>
import functools

import jax
import jax.numpy as jnp
from jax.experimental import pallas as pl
from jax.experimental.pallas import tpu as pltpu


def _round_up(x, m):
    return -(-x // m) * m


def _vae_kernel(x_ref, w1_ref, b1_ref, w2_ref, b2_ref,
                w3_ref, b3_ref, w4_ref, b4_ref, eps_ref, out_ref):
    # Padded dims recovered from the (static) ref shapes.
    f_pad = b2_ref.shape[-1] // 2      # padded `features`
    n_pad = b4_ref.shape[-1]           # padded logits width (inp_size -> 128)

    x = x_ref[...]                     # bf16 [TB, D0_pad]

    # enc1 + ReLU  (bf16 MXU operands, f32 accumulate)
    h1 = jnp.dot(x, w1_ref[...], preferred_element_type=jnp.float32) + b1_ref[...]
    h1 = jnp.maximum(h1, 0.0)                                         # f32 [TB, H_pad]

    # enc2: single fused [H_pad, 2*F_pad] matmul, then split halves
    # (equivalent to .view(-1, 2, features) -> mu = [:,0,:], log_var = [:,1,:])
    e2 = jnp.dot(h1.astype(jnp.bfloat16), w2_ref[...],
                 preferred_element_type=jnp.float32) + b2_ref[...]
    mu = e2[:, :f_pad]                                                # f32 [TB, F_pad]
    log_var = e2[:, f_pad:]                                           # f32 [TB, F_pad]

    # reparameterize: z = mu + eps * exp(0.5 * log_var)   (all f32 on VPU/EUP)
    std = jnp.exp(0.5 * log_var)
    z = mu + eps_ref[...] * std

    # dec1 + ReLU
    h2 = jnp.dot(z.astype(jnp.bfloat16), w3_ref[...],
                 preferred_element_type=jnp.float32) + b3_ref[...]
    h2 = jnp.maximum(h2, 0.0)

    # dec2 + softmax over last dim; padded logit columns carry bias -1e30 so
    # exp() maps them to exactly 0 and they drop out of the normalization.
    logits = jnp.dot(h2.astype(jnp.bfloat16), w4_ref[...],
                     preferred_element_type=jnp.float32) + b4_ref[...]
    m = jnp.max(logits, axis=-1, keepdims=True)
    e = jnp.exp(logits - m)
    recon = e * pl.reciprocal(jnp.sum(e, axis=-1, keepdims=True), approx=True)

    # Lane-dense output slab: [recon (n_pad) | mu (f_pad) | log_var (f_pad)],
    # every slice boundary 128-aligned -> unmasked full-vreg stores.
    out_ref[:, :n_pad] = recon
    out_ref[:, n_pad:n_pad + f_pad] = mu
    out_ref[:, n_pad + f_pad:] = log_var


def prepare_params(params, inp_size):
    """Pad + bf16-cast the (transposed, [in,out]) Linear weights once."""
    w1, b1, w2, b2, w3, b3, w4, b4 = params
    d0, h = w1.shape
    f = w2.shape[1] // 2
    d0p, hp = _round_up(d0, 128), _round_up(h, 128)
    fp, npad = _round_up(f, 128), _round_up(inp_size, 128)

    w1p = jnp.zeros((d0p, hp), jnp.bfloat16).at[:d0, :h].set(w1.astype(jnp.bfloat16))
    b1p = jnp.zeros((1, hp), jnp.float32).at[:, :h].set(b1)

    # enc2 stays one weight; mu half at cols [0:f], log_var half at [fp:fp+f].
    w2p = jnp.zeros((hp, 2 * fp), jnp.bfloat16)
    w2p = w2p.at[:h, :f].set(w2[:, :f].astype(jnp.bfloat16))
    w2p = w2p.at[:h, fp:fp + f].set(w2[:, f:].astype(jnp.bfloat16))
    b2p = jnp.zeros((1, 2 * fp), jnp.float32)
    b2p = b2p.at[:, :f].set(b2[:, :f]).at[:, fp:fp + f].set(b2[:, f:])

    w3p = jnp.zeros((fp, hp), jnp.bfloat16).at[:f, :h].set(w3.astype(jnp.bfloat16))
    b3p = jnp.zeros((1, hp), jnp.float32).at[:, :h].set(b3)

    # dec2 padded to 128 lanes; padded bias = -1e30 => softmax ignores them.
    w4p = jnp.zeros((hp, npad), jnp.bfloat16).at[:h, :inp_size].set(w4.astype(jnp.bfloat16))
    b4p = jnp.full((1, npad), -1e30, jnp.float32).at[:, :inp_size].set(b4)

    return (w1p, b1p, w2p, b2p, w3p, b3p, w4p, b4p)


def hybrid_vae_forward(idx, emb_table, pparams, eps, *, tile_b=128):
    """idx: int32 [B, inp_size]; returns (reconstruction, mu, log_var)."""
    B, inp_size = idx.shape
    emb_dim = emb_table.shape[1]
    d0 = inp_size * emb_dim
    f = eps.shape[1]

    w1p, b1p, w2p, b2p, w3p, b3p, w4p, b4p = pparams
    d0p = w1p.shape[0]
    fp = w2p.shape[1] // 2
    npad = w4p.shape[1]
    out_w = npad + 2 * fp

    tile_b = min(tile_b, B)
    assert B % tile_b == 0, "batch must be divisible by tile_b"
    grid = (B // tile_b,)

    # --- glue: embedding lookup + flatten + pad K dim, bf16 for the MXU ---
    # TODO(synk): at very large B the gather could be fused in-kernel via
    # scalar-prefetched indices; at these sizes it is noise.
    x = jnp.take(emb_table, idx, axis=0).reshape(B, d0)
    x = jnp.pad(x, ((0, 0), (0, d0p - d0))).astype(jnp.bfloat16)
    eps_p = jnp.pad(eps.astype(jnp.float32), ((0, 0), (0, fp - f)))

    batch_spec = lambda last: pl.BlockSpec((tile_b, last), lambda i: (i, 0))
    full_spec = lambda a: pl.BlockSpec(a.shape, lambda i: (0, 0))

    slab = pl.pallas_call(
        _vae_kernel,
        out_shape=jax.ShapeDtypeStruct((B, out_w), jnp.float32),
        grid_spec=pltpu.PrefetchScalarGridSpec(
            num_scalar_prefetch=0,
            grid=grid,
            in_specs=[
                batch_spec(d0p),                       # x
                full_spec(w1p), full_spec(b1p),
                full_spec(w2p), full_spec(b2p),
                full_spec(w3p), full_spec(b3p),
                full_spec(w4p), full_spec(b4p),
                batch_spec(fp),                        # eps
            ],
            out_specs=batch_spec(out_w),
        ),
        compiler_params=pltpu.CompilerParams(
            dimension_semantics=("parallel",)),
    )(x, w1p, b1p, w2p, b2p, w3p, b3p, w4p, b4p, eps_p)

    recon = slab[:, :inp_size]
    mu = slab[:, npad:npad + f]
    log_var = slab[:, npad + fp:npad + fp + f]
    return recon, mu, log_var


def _init_params(key, inp_size, emb_dim, hidden, features, vocab):
    """Deterministic synthetic init (shapes follow the nn.Module __init__)."""
    ks = jax.random.split(key, 10)
    scale = 0.05
    d0 = inp_size * emb_dim
    emb_table = jax.random.normal(ks[0], (vocab, emb_dim), jnp.float32)

    # Linear weights stored as [in, out] (transposed vs. PyTorch).
    w1 = scale * jax.random.normal(ks[1], (d0, hidden), jnp.float32)
    b1 = scale * jax.random.normal(ks[2], (1, hidden), jnp.float32)
    w2 = scale * jax.random.normal(ks[3], (hidden, 2 * features), jnp.float32)
    b2 = scale * jax.random.normal(ks[4], (1, 2 * features), jnp.float32)
    w3 = scale * jax.random.normal(ks[5], (features, hidden), jnp.float32)
    b3 = scale * jax.random.normal(ks[6], (1, hidden), jnp.float32)
    w4 = scale * jax.random.normal(ks[7], (hidden, inp_size), jnp.float32)
    b4 = scale * jax.random.normal(ks[8], (1, inp_size), jnp.float32)

    params = (w1, b1, w2, b2, w3, b3, w4, b4)
    return emb_table, params


def _reference_forward(idx, emb_table, params, eps):
    """Pure-JAX f32 reference matching the PyTorch forward."""
    w1, b1, w2, b2, w3, b3, w4, b4 = params
    B = idx.shape[0]
    x = jnp.take(emb_table, idx, axis=0).reshape(B, -1)
    h1 = jnp.maximum(x @ w1 + b1, 0.0)
    e2 = h1 @ w2 + b2
    f = e2.shape[1] // 2
    mu, log_var = e2[:, :f], e2[:, f:]
    z = mu + eps * jnp.exp(0.5 * log_var)
    h2 = jnp.maximum(z @ w3 + b3, 0.0)
    recon = jax.nn.softmax(h2 @ w4 + b4, axis=-1)
    return recon, mu, log_var


if __name__ == "__main__":
    # Small shapes consistent with the module's forward.
    B, inp_size, emb_dim = 256, 16, 3
    hidden, features, vocab = 64, 32, 50

    key = jax.random.PRNGKey(0)
    k_params, k_idx, k_eps = jax.random.split(key, 3)

    emb_table, params = _init_params(k_params, inp_size, emb_dim,
                                     hidden, features, vocab)
    pparams = prepare_params(params, inp_size)

    idx = jax.random.randint(k_idx, (B, inp_size), 0, vocab, dtype=jnp.int32)
    # eps ~ N(0, 1): deterministic stand-in for torch.randn_like(std).
    eps = jax.random.normal(k_eps, (B, features), jnp.float32)

    fwd = jax.jit(functools.partial(hybrid_vae_forward, tile_b=128))
    recon, mu, log_var = fwd(idx, emb_table, pparams, eps)
    jax.block_until_ready((recon, mu, log_var))

    # Sanity checks: shapes, softmax rows sum to ~1 (approx reciprocal), and
    # agreement with the f32 pure-JAX reference (bf16-MXU tolerance).
    assert recon.shape == (B, inp_size)
    assert mu.shape == (B, features) and log_var.shape == (B, features)
    assert jnp.allclose(jnp.sum(recon, axis=-1), 1.0, atol=5e-3)

    r_ref, mu_ref, lv_ref = _reference_forward(idx, emb_table, params, eps)
    assert jnp.allclose(recon, r_ref, atol=3e-2)
    assert jnp.allclose(mu, mu_ref, atol=3e-2)
    assert jnp.allclose(log_var, lv_ref, atol=3e-2)

    print("KERNEL_OK")
</pallas_src>

<mosaic_0001>
module attributes {stable_mosaic.version = 11 : i64} {
  func.func @_vae_kernel(%arg0: i32, %arg1: memref<128x128xbf16, #tpu.memory_space<vmem>>, %arg2: memref<128x128xbf16, #tpu.memory_space<vmem>>, %arg3: memref<1x128xf32, #tpu.memory_space<vmem>>, %arg4: memref<128x256xbf16, #tpu.memory_space<vmem>>, %arg5: memref<1x256xf32, #tpu.memory_space<vmem>>, %arg6: memref<128x128xbf16, #tpu.memory_space<vmem>>, %arg7: memref<1x128xf32, #tpu.memory_space<vmem>>, %arg8: memref<128x128xbf16, #tpu.memory_space<vmem>>, %arg9: memref<1x128xf32, #tpu.memory_space<vmem>>, %arg10: memref<128x128xf32, #tpu.memory_space<vmem>>, %arg11: memref<128x384xf32, #tpu.memory_space<vmem>>) attributes {dimension_semantics = [#tpu.dimension_semantics<parallel>], iteration_bounds = array<i64: 2>, scalar_prefetch = 0 : i64, scratch_operands = 0 : i64, tpu.core_type = #tpu.core_type<tc>, window_params = [{transform_indices = @transform_0, window_bounds = array<i64: 128, 128>}, {pipeline_mode = #tpu.pipeline_mode<synchronous>, transform_indices = @transform_1, window_bounds = array<i64: 128, 128>}, {pipeline_mode = #tpu.pipeline_mode<synchronous>, transform_indices = @transform_2, window_bounds = array<i64: 1, 128>}, {pipeline_mode = #tpu.pipeline_mode<synchronous>, transform_indices = @transform_3, window_bounds = array<i64: 128, 256>}, {pipeline_mode = #tpu.pipeline_mode<synchronous>, transform_indices = @transform_4, window_bounds = array<i64: 1, 256>}, {pipeline_mode = #tpu.pipeline_mode<synchronous>, transform_indices = @transform_5, window_bounds = array<i64: 128, 128>}, {pipeline_mode = #tpu.pipeline_mode<synchronous>, transform_indices = @transform_6, window_bounds = array<i64: 1, 128>}, {pipeline_mode = #tpu.pipeline_mode<synchronous>, transform_indices = @transform_7, window_bounds = array<i64: 128, 128>}, {pipeline_mode = #tpu.pipeline_mode<synchronous>, transform_indices = @transform_8, window_bounds = array<i64: 1, 128>}, {transform_indices = @transform_9, window_bounds = array<i64: 128, 128>}, {transform_indices = @transform_10, window_bounds = array<i64: 128, 384>}]} {
    %c0 = arith.constant 0 : index
    %c0_0 = arith.constant 0 : index
    %0 = vector.load %arg1[%c0, %c0_0] : memref<128x128xbf16, #tpu.memory_space<vmem>>, vector<128x128xbf16>
    %c0_1 = arith.constant 0 : index
    %c0_2 = arith.constant 0 : index
    %1 = vector.load %arg2[%c0_1, %c0_2] : memref<128x128xbf16, #tpu.memory_space<vmem>>, vector<128x128xbf16>
    %cst = arith.constant dense<0.000000e+00> : vector<128x128xf32>
    %2 = tpu.matmul %0, %1, %cst {dimension_numbers = #tpu.dot_dimension_numbers<[1], [0], [0], [1], [0, 0, 1, 1], [], []>} : vector<128x128xbf16>, vector<128x128xbf16>, vector<128x128xf32> -> vector<128x128xf32>
    %c0_3 = arith.constant 0 : index
    %c0_4 = arith.constant 0 : index
    %3 = vector.load %arg3[%c0_3, %c0_4] : memref<1x128xf32, #tpu.memory_space<vmem>>, vector<1x128xf32>
    %4 = vector.broadcast %3 : vector<1x128xf32> to vector<128x128xf32>
    %5 = arith.addf %2, %4 : vector<128x128xf32>
    %cst_5 = arith.constant 0.000000e+00 : f32
    %6 = vector.broadcast %cst_5 : f32 to vector<128x128xf32>
    %7 = arith.maximumf %5, %6 : vector<128x128xf32>
    %8 = arith.truncf %7 : vector<128x128xf32> to vector<128x128xbf16>
    %c0_6 = arith.constant 0 : index
    %c0_7 = arith.constant 0 : index
    %9 = vector.load %arg4[%c0_6, %c0_7] : memref<128x256xbf16, #tpu.memory_space<vmem>>, vector<128x256xbf16>
    %cst_8 = arith.constant dense<0.000000e+00> : vector<128x256xf32>
    %10 = tpu.matmul %8, %9, %cst_8 {dimension_numbers = #tpu.dot_dimension_numbers<[1], [0], [0], [1], [0, 0, 1, 1], [], []>} : vector<128x128xbf16>, vector<128x256xbf16>, vector<128x256xf32> -> vector<128x256xf32>
    %c0_9 = arith.constant 0 : index
    %c0_10 = arith.constant 0 : index
    %11 = vector.load %arg5[%c0_9, %c0_10] : memref<1x256xf32, #tpu.memory_space<vmem>>, vector<1x256xf32>
    %12 = vector.broadcast %11 : vector<1x256xf32> to vector<128x256xf32>
    %13 = arith.addf %10, %12 : vector<128x256xf32>
    %14 = vector.extract_strided_slice %13 {offsets = [0, 0], sizes = [128, 128], strides = [1, 1]} : vector<128x256xf32> to vector<128x128xf32>
    %15 = vector.extract_strided_slice %13 {offsets = [0, 128], sizes = [128, 128], strides = [1, 1]} : vector<128x256xf32> to vector<128x128xf32>
    %cst_11 = arith.constant 5.000000e-01 : f32
    %16 = vector.broadcast %cst_11 : f32 to vector<128x128xf32>
    %17 = arith.mulf %16, %15 : vector<128x128xf32>
    %18 = math.exp %17 : vector<128x128xf32>
    %c0_12 = arith.constant 0 : index
    %c0_13 = arith.constant 0 : index
    %19 = vector.load %arg10[%c0_12, %c0_13] : memref<128x128xf32, #tpu.memory_space<vmem>>, vector<128x128xf32>
    %20 = arith.mulf %19, %18 : vector<128x128xf32>
    %21 = arith.addf %14, %20 : vector<128x128xf32>
    %22 = arith.truncf %21 : vector<128x128xf32> to vector<128x128xbf16>
    %c0_14 = arith.constant 0 : index
    %c0_15 = arith.constant 0 : index
    %23 = vector.load %arg6[%c0_14, %c0_15] : memref<128x128xbf16, #tpu.memory_space<vmem>>, vector<128x128xbf16>
    %cst_16 = arith.constant dense<0.000000e+00> : vector<128x128xf32>
    %24 = tpu.matmul %22, %23, %cst_16 {dimension_numbers = #tpu.dot_dimension_numbers<[1], [0], [0], [1], [0, 0, 1, 1], [], []>} : vector<128x128xbf16>, vector<128x128xbf16>, vector<128x128xf32> -> vector<128x128xf32>
    %c0_17 = arith.constant 0 : index
    %c0_18 = arith.constant 0 : index
    %25 = vector.load %arg7[%c0_17, %c0_18] : memref<1x128xf32, #tpu.memory_space<vmem>>, vector<1x128xf32>
    %26 = vector.broadcast %25 : vector<1x128xf32> to vector<128x128xf32>
    %27 = arith.addf %24, %26 : vector<128x128xf32>
    %cst_19 = arith.constant 0.000000e+00 : f32
    %28 = vector.broadcast %cst_19 : f32 to vector<128x128xf32>
    %29 = arith.maximumf %27, %28 : vector<128x128xf32>
    %30 = arith.truncf %29 : vector<128x128xf32> to vector<128x128xbf16>
    %c0_20 = arith.constant 0 : index
    %c0_21 = arith.constant 0 : index
    %31 = vector.load %arg8[%c0_20, %c0_21] : memref<128x128xbf16, #tpu.memory_space<vmem>>, vector<128x128xbf16>
    %cst_22 = arith.constant dense<0.000000e+00> : vector<128x128xf32>
    %32 = tpu.matmul %30, %31, %cst_22 {dimension_numbers = #tpu.dot_dimension_numbers<[1], [0], [0], [1], [0, 0, 1, 1], [], []>} : vector<128x128xbf16>, vector<128x128xbf16>, vector<128x128xf32> -> vector<128x128xf32>
    %c0_23 = arith.constant 0 : index
    %c0_24 = arith.constant 0 : index
    %33 = vector.load %arg9[%c0_23, %c0_24] : memref<1x128xf32, #tpu.memory_space<vmem>>, vector<1x128xf32>
    %34 = vector.broadcast %33 : vector<1x128xf32> to vector<128x128xf32>
    %35 = arith.addf %32, %34 : vector<128x128xf32>
    %cst_25 = arith.constant dense<0xFF800000> : vector<128xf32>
    %36 = vector.multi_reduction <maximumf>, %35, %cst_25 [1] : vector<128x128xf32> to vector<128xf32>
    %37 = vector.shape_cast %36 : vector<128xf32> to vector<128x1xf32>
    %38 = vector.broadcast %37 : vector<128x1xf32> to vector<128x128xf32>
    %39 = arith.subf %35, %38 : vector<128x128xf32>
    %40 = math.exp %39 : vector<128x128xf32>
    %cst_26 = arith.constant dense<0.000000e+00> : vector<128xf32>
    %41 = vector.multi_reduction <add>, %40, %cst_26 [1] : vector<128x128xf32> to vector<128xf32>
    %42 = vector.shape_cast %41 : vector<128xf32> to vector<128x1xf32>
    %43 = tpu.reciprocal %42 {approx = true} : vector<128x1xf32> -> vector<128x1xf32>
    %44 = vector.broadcast %43 : vector<128x1xf32> to vector<128x128xf32>
    %45 = arith.mulf %40, %44 : vector<128x128xf32>
    %c0_27 = arith.constant 0 : index
    %c0_28 = arith.constant 0 : index
    %46 = vector.load %arg11[%c0_27, %c0_28] : memref<128x384xf32, #tpu.memory_space<vmem>>, vector<128x128xf32>
    tpu.vector_store %arg11[%c0_27, %c0_28], %45 {strides = array<i32>} : memref<128x384xf32, #tpu.memory_space<vmem>>, vector<128x128xf32>,
    %c0_29 = arith.constant 0 : index
    %c128 = arith.constant 128 : index
    %47 = vector.load %arg11[%c0_29, %c128] : memref<128x384xf32, #tpu.memory_space<vmem>>, vector<128x128xf32>
    tpu.vector_store %arg11[%c0_29, %c128], %14 {strides = array<i32>} : memref<128x384xf32, #tpu.memory_space<vmem>>, vector<128x128xf32>,
    %c0_30 = arith.constant 0 : index
    %c256 = arith.constant 256 : index
    %48 = vector.load %arg11[%c0_30, %c256] : memref<128x384xf32, #tpu.memory_space<vmem>>, vector<128x128xf32>
    tpu.vector_store %arg11[%c0_30, %c256], %15 {strides = array<i32>} : memref<128x384xf32, #tpu.memory_space<vmem>>, vector<128x128xf32>,
    return
  }
  func.func @transform_0(%arg0: i32) -> (i32, i32) {
    %c0_i32 = arith.constant 0 : i32
    %c0_i32_0 = arith.constant 0 : i32
    return %arg0, %c0_i32 : i32, i32
  }
  func.func @transform_1(%arg0: i32) -> (i32, i32) {
    %c0_i32 = arith.constant 0 : i32
    %c0_i32_0 = arith.constant 0 : i32
    %c0_i32_1 = arith.constant 0 : i32
    return %c0_i32, %c0_i32_0 : i32, i32
  }
  func.func @transform_2(%arg0: i32) -> (i32, i32) {
    %c0_i32 = arith.constant 0 : i32
    %c0_i32_0 = arith.constant 0 : i32
    %c0_i32_1 = arith.constant 0 : i32
    return %c0_i32, %c0_i32_0 : i32, i32
  }
  func.func @transform_3(%arg0: i32) -> (i32, i32) {
    %c0_i32 = arith.constant 0 : i32
    %c0_i32_0 = arith.constant 0 : i32
    %c0_i32_1 = arith.constant 0 : i32
    return %c0_i32, %c0_i32_0 : i32, i32
  }
  func.func @transform_4(%arg0: i32) -> (i32, i32) {
    %c0_i32 = arith.constant 0 : i32
    %c0_i32_0 = arith.constant 0 : i32
    %c0_i32_1 = arith.constant 0 : i32
    return %c0_i32, %c0_i32_0 : i32, i32
  }
  func.func @transform_5(%arg0: i32) -> (i32, i32) {
    %c0_i32 = arith.constant 0 : i32
    %c0_i32_0 = arith.constant 0 : i32
    %c0_i32_1 = arith.constant 0 : i32
    return %c0_i32, %c0_i32_0 : i32, i32
  }
  func.func @transform_6(%arg0: i32) -> (i32, i32) {
    %c0_i32 = arith.constant 0 : i32
    %c0_i32_0 = arith.constant 0 : i32
    %c0_i32_1 = arith.constant 0 : i32
    return %c0_i32, %c0_i32_0 : i32, i32
  }
  func.func @transform_7(%arg0: i32) -> (i32, i32) {
    %c0_i32 = arith.constant 0 : i32
    %c0_i32_0 = arith.constant 0 : i32
    %c0_i32_1 = arith.constant 0 : i32
    return %c0_i32, %c0_i32_0 : i32, i32
  }
  func.func @transform_8(%arg0: i32) -> (i32, i32) {
    %c0_i32 = arith.constant 0 : i32
    %c0_i32_0 = arith.constant 0 : i32
    %c0_i32_1 = arith.constant 0 : i32
    return %c0_i32, %c0_i32_0 : i32, i32
  }
  func.func @transform_9(%arg0: i32) -> (i32, i32) {
    %c0_i32 = arith.constant 0 : i32
    %c0_i32_0 = arith.constant 0 : i32
    return %arg0, %c0_i32 : i32, i32
  }
  func.func @transform_10(%arg0: i32) -> (i32, i32) {
    %c0_i32 = arith.constant 0 : i32
    %c0_i32_0 = arith.constant 0 : i32
    return %arg0, %c0_i32 : i32, i32
  }
}

</mosaic_0001>

<bundles_post_ra>
// kernel: hybrid_vae_forward.1
= control target key start
LH: loop header
LB: loop body
LE: loop exit
PB: predicated region body
PF: predicated region fallthrough
CT: control target
= control target key end

     0   :  { %s2041_s13 = smov 0   ;;  %s2502_s0 = inlined_call_operand.vmem [shape: bf16[256,128], index: 0, kind: input, shape index: {}]   ;;  %s2503_s1 = inlined_call_operand.vmem [shape: bf16[128,128], index: 1, kind: input, shape index: {}]   ;;  %s2504_s2 = inlined_call_operand.vmem [shape: f32[1,128], index: 2, kind: input, shape index: {}]   ;;  %s2505_s3 = inlined_call_operand.vmem [shape: bf16[128,256], index: 3, kind: input, shape index: {}]   ;;  %s2506_s4 = inlined_call_operand.vmem [shape: f32[1,256], index: 4, kind: input, shape index: {}]   ;;  %s2507_s5 = inlined_call_operand.vmem [shape: bf16[128,128], index: 5, kind: input, shape index: {}]   ;;  %s2508_s6 = inlined_call_operand.vmem [shape: f32[1,128], index: 6, kind: input, shape index: {}]   ;;  %s2509_s7 = inlined_call_operand.vmem [shape: bf16[128,128], index: 7, kind: input, shape index: {}]   ;;  %s2510_s8 = inlined_call_operand.vmem [shape: f32[1,128], index: 8, kind: input, shape index: {}]   ;;  %s2511_s9 = inlined_call_operand.vmem [shape: f32[256,128], index: 9, kind: input, shape index: {}]   ;;  %s2512_s10 = inlined_call_operand.vmem [shape: f32[256,384], index: 10, kind: output, shape index: {}]  }
   0x1 LB: > { %s1591_s14 = sadd.s32 4294967295, %s1983_s13   ;;  %p1595_p0 = scmp.ge.s32.totalorder %s1983_s13, 1  ;;  %s1983_s13 = sphi %s2041_s13, %s20_s13  }
   0x2   : > { %p324_p1 = scmp.lt.s32.totalorder %s1983_s13, 3 }
   0x4   : > { %p325_p2 = pnand %p1595_p0, %p324_p1 }
   0x5   : > { %s1596_s17 = sshll.u32 (!%p325_p2), %s1591_s14, 4 }
   0x6   : > { %328 = sbr.rel (%p325_p2) target bundleno = 1252 (0x4e4), region = 60  ;;  %p369_p3 = scmp.lt.s32.totalorder (!%p325_p2), %s1596_s17, 31 }
   0xb   : > { %v1825_v0 = vld [vmem:[%s2503_s1 + $0x38] sm:$0xff]   ;;  %v1826_v1 = vld [vmem:[%s2503_s1 + $0x30] sm:$0xff]   ;;  %s2514_s17 = smov (!%p369_p3, %s1596_s17), 31  ;;  %v1827_v2 = vld [vmem:[%s2503_s1 + $0x28] sm:$0xff]   ;;  %v1985_v32 = vmov 0  }
   0xc   : > { %1703 = vmatprep.subr.bf16.mxu0 %v1825_v0  ;;  %s1597_s22 = sshll.u32 %s2514_s17, 2  ;;  %v1828_v3 = vld [vmem:[%s2503_s1 + $0x20] sm:$0xff]   ;;  %v1829_v5 = vld [vmem:[%s2503_s1 + $0x18] sm:$0xff]   ;;  %v1830_v6 = vld [vmem:[%s2503_s1 + $0x10] sm:$0xff]   ;;  %784 = vmatprep.mubr.bf16.mxu1 %v1985_v32  ;;  %s1815_s28 = smul.u32 24, %s2514_s17 }
   0xd   : > { %1704 = vmatpush3.bf16.msra.mxu0 %v1825_v0  ;;  %s2064_s25 = scalar_lea.vmem %s2502_s0, %s1597_s22  ;;  %v1841_v7 = vld [vmem:[%s2505_s3 + $0x74] ss:$8 sps:$4 sm:$0xff]   ;;  %v1843_v8 = vld [vmem:[%s2505_s3 + $0x70] ss:$8 sps:$4 sm:$0xff]   ;;  %v1844_v9 = vld [vmem:[%s2505_s3 + $0x64] ss:$8 sps:$4 sm:$0xff]  }
   0xe   : > { %1705 = vmatprep.subr.bf16.mxu0 %v1826_v1  ;;  %v1833_v4 = vld [vmem:[%s2064_s25] sm:$0xff]   ;;  %752 = vmatprep.subr.bf16.mxu1 %v1841_v7  ;;  %v1831_v10 = vld [vmem:[%s2503_s1 + $0x8] sm:$0xff]   ;;  %v1847_v12 = vld [vmem:[%s2505_s3 + $0x54] ss:$8 sps:$4 sm:$0xff]   ;;  %s2219_s30 = scalar_lea.vmem %s2512_s10, %s1815_s28  ;;  %s1599_s11 = sshll.u32 %s2514_s17, 3 }
   0xf   : > { %1719 = vmatprep.mubr.bf16.mxu0 %v1833_v4  ;;  %753 = vmatpush1.bf16.msra.mxu1 %v1843_v8  ;;  %v1846_v11 = vld [vmem:[%s2505_s3 + $0x60] ss:$8 sps:$4 sm:$0xff]   ;;  %v1849_v14 = vld [vmem:[%s2505_s3 + $0x50] ss:$8 sps:$4 sm:$0xff]   ;;  %v1850_v15 = vld [vmem:[%s2505_s3 + $0x44] ss:$8 sps:$4 sm:$0xff]   ;;  %s2256_s15 = scalar_lea.vmem %s2511_s9, %s1599_s11 }
  0x10   : > { %754 = vmatprep.subr.bf16.mxu1 %v1844_v9  ;;  %v1832_v13 = vld [vmem:[%s2503_s1] sm:$0xff]   ;;  %v1853_v17 = vld [vmem:[%s2505_s3 + $0x34] ss:$8 sps:$4 sm:$0xff]   ;;  %v1834_v18 = vld [vmem:[%s2064_s25 + $0x8] sm:$0xff]  }
  0x11   : > { %1706 = vmatpush3.bf16.msra.mxu0 %v1826_v1  ;;  %v1852_v16 = vld [vmem:[%s2505_s3 + $0x40] ss:$8 sps:$4 sm:$0xff]   ;;  %v1835_v19 = vld [vmem:[%s2064_s25 + $0x10] sm:$0xff]   ;;  %v1836_v21 = vld [vmem:[%s2064_s25 + $0x18] sm:$0xff]  }
  0x12   : > { %1707 = vmatprep.subr.bf16.mxu0 %v1827_v2  ;;  %v1855_v20 = vld [vmem:[%s2505_s3 + $0x30] ss:$8 sps:$4 sm:$0xff]   ;;  %v1837_v22 = vld [vmem:[%s2064_s25 + $0x20] sm:$0xff]   ;;  %v1838_v23 = vld [vmem:[%s2064_s25 + $0x28] sm:$0xff]  }
  0x13   : > { %755 = vmatpush1.bf16.msra.mxu1 %v1846_v11  ;;  %v1839_v24 = vld [vmem:[%s2064_s25 + $0x30] sm:$0xff]   ;;  %v1840_v25 = vld [vmem:[%s2064_s25 + $0x38] sm:$0xff]   ;;  %v1856_v26 = vld [vmem:[%s2505_s3 + $0x24] ss:$8 sps:$4 sm:$0xff]  }
  0x14   : > { %756 = vmatprep.subr.bf16.mxu1 %v1847_v12  ;;  %v1858_v27 = vld [vmem:[%s2505_s3 + $0x20] ss:$8 sps:$4 sm:$0xff]   ;;  %v1859_v28 = vld [vmem:[%s2505_s3 + $0x14] ss:$8 sps:$4 sm:$0xff]   ;;  %v1861_v29 = vld [vmem:[%s2505_s3 + $0x10] ss:$8 sps:$4 sm:$0xff]  }
  0x15   : > { %1708 = vmatpush3.bf16.msra.mxu0 %v1827_v2  ;;  %v1862_v30 = vld [vmem:[%s2505_s3 + $0x4] ss:$8 sps:$4 sm:$0xff]   ;;  %v1864_v31 = vld [vmem:[%s2505_s3] ss:$8 sps:$4 sm:$0xff]  }
  0x16   : > { %1709 = vmatprep.subr.bf16.mxu0 %v1828_v3  ;;  %v1602_v35 = vld [vmem:[%s2504_s2] ss:$0 sm:$0xff] }
  0x17   : > { %757 = vmatpush1.bf16.msra.mxu1 %v1849_v14 }
  0x18   : > { %758 = vmatprep.subr.bf16.mxu1 %v1850_v15 }
  0x19   : > { %1710 = vmatpush3.bf16.msra.mxu0 %v1828_v3 }
  0x1a   : > { %1711 = vmatprep.subr.bf16.mxu0 %v1829_v5 }
  0x1b   : > { %759 = vmatpush1.bf16.msra.mxu1 %v1852_v16 }
  0x1c   : > { %760 = vmatprep.subr.bf16.mxu1 %v1853_v17 }
  0x1d   : > { %1712 = vmatpush3.bf16.msra.mxu0 %v1829_v5 }
  0x1e   : > { %1713 = vmatprep.subr.bf16.mxu0 %v1830_v6 }
  0x1f   : > { %761 = vmatpush1.bf16.msra.mxu1 %v1855_v20 }
  0x20   : > { %762 = vmatprep.subr.bf16.mxu1 %v1856_v26  ;;  %v1865_v26 = vld [vmem:[%s2507_s5 + $0x38] sm:$0xff]  }
  0x21   : > { %1714 = vmatpush3.bf16.msra.mxu0 %v1830_v6 }
  0x22   : > { %1715 = vmatprep.subr.bf16.mxu0 %v1831_v10 }
  0x23   : > { %763 = vmatpush1.bf16.msra.mxu1 %v1858_v27  ;;  %v1866_v27 = vld [vmem:[%s2507_s5 + $0x30] sm:$0xff]  }
  0x24   : > { %764 = vmatprep.subr.bf16.mxu1 %v1859_v28  ;;  %v1867_v28 = vld [vmem:[%s2507_s5 + $0x28] sm:$0xff]  }
  0x25   : > { %1716 = vmatpush3.bf16.msra.mxu0 %v1831_v10 }
  0x26   : > { %1717 = vmatprep.subr.bf16.mxu0 %v1832_v13 }
  0x27   : > { %765 = vmatpush1.bf16.msra.mxu1 %v1861_v29  ;;  %v1868_v29 = vld [vmem:[%s2507_s5 + $0x20] sm:$0xff]  }
  0x28   : > { %766 = vmatprep.subr.bf16.mxu1 %v1862_v30  ;;  %v1869_v30 = vld [vmem:[%s2507_s5 + $0x18] sm:$0xff]  }
  0x29   : > { %1718 = vmatpush3.bf16.msra.mxu0 %v1832_v13 }
  0x2a   : > { %1735 = vmatprep.subr.bf16.mxu0 %v1865_v26 }
  0x2b   : > { %767 = vmatpush1.bf16.msra.mxu1 %v1864_v31  ;;  %v1870_v31 = vld [vmem:[%s2507_s5 + $0x10] sm:$0xff]  }
  0x2c   : > { %1720 = vmatmul.mubr.bf16.vlgmr.msra.gmra.mxu0 %v1834_v18 }
  0x2d   : > { %1723 = vmatprep.mubr.bf16.mxu0 %v1835_v19  ;;  %1736 = vmatpush3.bf16.msra.mxu0 %v1865_v26 }
  0x2e   : > { %1737 = vmatprep.subr.bf16.mxu0 %v1866_v27 }
  0x31   : > { %1738 = vmatpush3.bf16.msra.mxu0 %v1866_v27 }
  0x32   : > { %1739 = vmatprep.subr.bf16.mxu0 %v1867_v28 }
  0x34   : > { %1724 = vmatmul.mubr.bf16.gmra.mxu0 %v1836_v21 }
  0x35   : > { %1727 = vmatprep.mubr.bf16.mxu0 %v1837_v22  ;;  %1740 = vmatpush3.bf16.msra.mxu0 %v1867_v28 }
  0x36   : > { %1741 = vmatprep.subr.bf16.mxu0 %v1868_v29 }
  0x39   : > { %1742 = vmatpush3.bf16.msra.mxu0 %v1868_v29 }
  0x3a   : > { %1743 = vmatprep.subr.bf16.mxu0 %v1869_v30 }
  0x3c   : > { %1728 = vmatmul.mubr.bf16.gmra.mxu0 %v1838_v23 }
  0x3d   : > { %1731 = vmatprep.mubr.bf16.mxu0 %v1839_v24  ;;  %1744 = vmatpush3.bf16.msra.mxu0 %v1869_v30 }
  0x3e   : > { %1745 = vmatprep.subr.bf16.mxu0 %v1870_v31 }
  0x41   : > { %1746 = vmatpush3.bf16.msra.mxu0 %v1870_v31 }
  0x44   : > { %1732 = vmatmul.mubr.bf16.gmra.mxu0 %v1840_v25 }
  0xec   : > { %v1721_v33 = vpop.f32.mrf.mxu0 }
  0xed   : > { %v566_v47 = vadd.f32 %v1721_v33, %v1602_v35  ;;  %v1872_v33 = vld [vmem:[%s2507_s5] sm:$0xff]  }
  0xee   : > { %v557_v34 = vpop.f32.mrf.mxu0 }
  0xef   : > { %v558_v37 = vadd.f32 %v1602_v35, %v557_v34  ;;  %v622_v50 = vmax.f32 %v566_v47, 0.0  ;;  %v2175_v34 = vld [vmem:[%s2509_s7 + $0x38] sm:$0xff]  }
  0xf0   : > { %v1722_v36 = vpop.f32.mrf.mxu0  ;;  %1799 = vmatprep.subr.bf16.mxu1 %v2175_v34 }
  0xf1   : > { %v620_v41 = vmax.f32 %v558_v37, 0.0  ;;  %v569_v44 = vadd.f32 %v1722_v36, %v1602_v35  ;;  %v2189_v36 = vld [vmem:[%s2509_s7 + $0x28] sm:$0xff]   ;;  %v2196_v37 = vld [vmem:[%s2509_s7 + $0x20] sm:$0xff]  }
  0xf2   : > { %v560_v38 = vpop.f32.mrf.mxu0 }
  0xf3   : > { %v561_v39 = vadd.f32 %v1602_v35, %v560_v38  ;;  %v623_v48 = vmax.f32 %v569_v44, 0.0  ;;  %v2203_v38 = vld [vmem:[%s2509_s7 + $0x18] sm:$0xff]  }
  0xf4   : > { %v1725_v40 = vpop.f32.mrf.mxu0 }
  0xf5   : > { %v621_v42 = vmax.f32 %v561_v39, 0.0  ;;  %v637_v51 = vpack.c.bf16 %v623_v48, %v622_v50  ;;  %v582_v58 = vadd.f32 %v1725_v40, %v1602_v35  ;;  %v662_v39 = vlaneseq }
  0xf6   : > { %v573_v43 = vpop.f32.mrf.mxu0 }
  0xf7   : > { %v636_v45 = vpack.c.bf16 %v621_v42, %v620_v41  ;;  %v574_v52 = vadd.f32 %v1602_v35, %v573_v43  ;;  %v626_v62 = vmax.f32 %v582_v58, 0.0  ;;  %v663_v40 = vshrl.u32 %v662_v39, 7  ;;  %v660_v42 = vld [vmem:[%s2506_s4] sm:$0x3] }
  0xf8   : > { %v1726_v46 = vpop.f32.mrf.mxu0 }
  0xf9   : > { %785 = vmatmul.mubr.bf16.vlgmr.msra.gmra.mxu1 %v636_v45  ;;  %v624_v55 = vmax.f32 %v574_v52, 0.0  ;;  %v585_v59 = vadd.f32 %v1726_v46, %v1602_v35  ;;  %v664_v41 = vsub.s32 0, %v663_v40  ;;  %v668_v43 = vsub.s32 1, %v663_v40 }
  0xfa   : > { %794 = vmatprep.mubr.bf16.mxu1 %v1985_v32  ;;  %v576_v49 = vpop.f32.mrf.mxu0  ;;  %1807 = vmatpush3.bf16.msra.mxu1 %v2175_v34 }
  0xfb   : > { %v577_v53 = vadd.f32 %v1602_v35, %v576_v49  ;;  %v627_v63 = vmax.f32 %v585_v59, 0.0  ;;  %v2212_v44 = vrot.slane %v660_v42, %v664_v41  ;;  %v2214_v45 = vrot.slane %v660_v42, %v668_v43 }
  0xfc   : > { %v1729_v54 = vpop.f32.mrf.mxu0 }
  0xfd   : > { %v625_v56 = vmax.f32 %v577_v53, 0.0  ;;  %v639_v1 = vpack.c.bf16 %v627_v63, %v626_v62  ;;  %v598_v8 = vadd.f32 %v1729_v54, %v1602_v35 }
  0xfe   : > { %v589_v57 = vpop.f32.mrf.mxu0 }
  0xff   : > { %v638_v60 = vpack.c.bf16 %v625_v56, %v624_v55  ;;  %v590_v2 = vadd.f32 %v1602_v35, %v589_v57  ;;  %v630_v12 = vmax.f32 %v598_v8, 0.0 }
 0x100   : > { %v1730_v61 = vpop.f32.mrf.mxu0 }
 0x101   : > { %795 = vmatmul.mubr.bf16.gmra.mxu1 %v637_v51  ;;  %v628_v5 = vmax.f32 %v590_v2, 0.0  ;;  %v601_v9 = vadd.f32 %v1730_v61, %v1602_v35 }
 0x102   : > { %804 = vmatprep.mubr.bf16.mxu1 %v1985_v32  ;;  %v592_v0 = vpop.f32.mrf.mxu0 }
 0x103   : > { %v593_v3 = vadd.f32 %v1602_v35, %v592_v0  ;;  %v631_v13 = vmax.f32 %v601_v9, 0.0 }
 0x104   : > { %v1733_v4 = vpop.f32.mrf.mxu0 }
 0x105   : > { %v629_v6 = vmax.f32 %v593_v3, 0.0  ;;  %v641_v15 = vpack.c.bf16 %v631_v13, %v630_v12  ;;  %v614_v20 = vadd.f32 %v1733_v4, %v1602_v35  ;;  %v913_v13 = vld [vmem:[%s2256_s15] sm:$0xff] }
 0x106   : > { %v605_v7 = vpop.f32.mrf.mxu0 }
 0x107   : > { %v640_v10 = vpack.c.bf16 %v629_v6, %v628_v5  ;;  %v606_v16 = vadd.f32 %v1602_v35, %v605_v7  ;;  %v634_v23 = vmax.f32 %v614_v20, 0.0 }
 0x108   : > { %v1734_v11 = vpop.f32.mrf.mxu0 }
 0x109   : > { %805 = vmatmul.mubr.bf16.gmra.mxu1 %v638_v60  ;;  %v632_v18 = vmax.f32 %v606_v16, 0.0  ;;  %v617_v21 = vadd.f32 %v1734_v11, %v1602_v35 }
 0x10a   : > { %814 = vmatprep.mubr.bf16.mxu1 %v1985_v32  ;;  %v608_v14 = vpop.f32.mrf.mxu0 }
 0x10b   : > { %v609_v17 = vadd.f32 %v1602_v35, %v608_v14  ;;  %v635_v24 = vmax.f32 %v617_v21, 0.0  ;;  %v2181_v35 = vld [vmem:[%s2509_s7 + $0x30] sm:$0xff]  }
 0x10c   : > { %1800 = vmatprep.subr.bf16.mxu1 %v2181_v35 }
 0x10d   : > { %v633_v19 = vmax.f32 %v609_v17, 0.0  ;;  %v643_v25 = vpack.c.bf16 %v635_v24, %v634_v23  ;;  %1808 = vmatpush3.bf16.msra.mxu1 %v2181_v35 }
 0x10e   : > { %1801 = vmatprep.subr.bf16.mxu1 %v2189_v36 }
 0x10f   : > { %v642_v22 = vpack.c.bf16 %v633_v19, %v632_v18  ;;  %v914_v19 = vld [vmem:[%s2256_s15 + $0x8] sm:$0xff] }
 0x111   : > { %815 = vmatmul.mubr.bf16.gmra.mxu1 %v639_v1 }
 0x112   : > { %824 = vmatprep.mubr.bf16.mxu1 %v1985_v32  ;;  %1809 = vmatpush3.bf16.msra.mxu1 %v2189_v36 }
 0x113   : > { %1802 = vmatprep.subr.bf16.mxu1 %v2196_v37 }
 0x116   : > { %1810 = vmatpush3.bf16.msra.mxu1 %v2196_v37 }
 0x117   : > { %1803 = vmatprep.subr.bf16.mxu1 %v2203_v38 }
 0x119   : > { %825 = vmatmul.mubr.bf16.gmra.mxu1 %v640_v10 }
 0x11a   : > { %834 = vmatprep.mubr.bf16.mxu1 %v1985_v32  ;;  %1811 = vmatpush3.bf16.msra.mxu1 %v2203_v38 }
 0x121   : > { %835 = vmatmul.mubr.bf16.gmra.mxu1 %v641_v15 }
 0x122   : > { %844 = vmatprep.mubr.bf16.mxu1 %v1985_v32 }
 0x129   : > { %845 = vmatmul.mubr.bf16.gmra.mxu1 %v642_v22 }
 0x12a   : > { %854 = vmatprep.mubr.bf16.mxu1 %v1985_v32  ;;  %v1871_v32 = vld [vmem:[%s2507_s5 + $0x8] sm:$0xff]  }
 0x12b   : > { %1747 = vmatprep.subr.bf16.mxu0 %v1871_v32 }
 0x12c   : > { %1748 = vmatpush3.bf16.msra.mxu0 %v1871_v32 }
 0x12d   : > { %1749 = vmatprep.subr.bf16.mxu0 %v1872_v33 }
 0x130   : > { %1750 = vmatpush3.bf16.msra.mxu0 %v1872_v33  ;;  %v915_v33 = vld [vmem:[%s2256_s15 + $0x10] sm:$0xff] }
 0x131   : > { %855 = vmatmul.mubr.bf16.gmra.mxu1 %v643_v25  ;;  %1767 = vmatprep.subr.bf16.mxu0 %v2175_v34 }
 0x1b9   : > { %v786_v46 = vpop.f32.mrf.mxu1 }
 0x1ba   : > { %v2222_v47 = vadd.f32 %v786_v46, %v2212_v44 }
 0x1bb   : > { %v788_v48 = vpop.f32.mrf.mxu1 }
 0x1bc   : > { %1489 = vst [vmem:[%s2219_s30 + $0x8] sm:$0xff] %v2222_v47  ;;  %v789_v49 = vadd.f32 %v788_v48, %v2214_v45 }
 0x1bd   : > { %v790_v50 = vpop.f32.mrf.mxu1 }
 0x1be   : > { %v865_v51 = vmul.f32 0.5, %v789_v49  ;;  %1505 = vst [vmem:[%s2219_s30 + $0x10] sm:$0xff] %v789_v49  ;;  %v2229_v52 = vadd.f32 %v790_v50, %v2212_v44 }
 0x1bf   : > { %v792_v53 = vpop.f32.mrf.mxu1 }
 0x1c0   : > { %v881_v54 = vmul.f32 1.442695, %v865_v51  ;;  %1490 = vst [vmem:[%s2219_s30 + $0x20] sm:$0xff] %v2229_v52  ;;  %v793_v55 = vadd.f32 %v792_v53, %v2214_v45 }
 0x1c1   : > { %v796_v56 = vpop.f32.mrf.mxu1 }
 0x1c2   : > { %1881 = vpow2.f32 %v881_v54  ;;  %v866_v57 = vmul.f32 0.5, %v793_v55  ;;  %1506 = vst [vmem:[%s2219_s30 + $0x28] sm:$0xff] %v793_v55  ;;  %v2236_v58 = vadd.f32 %v796_v56, %v2212_v44 }
 0x1c3   : > { %v798_v59 = vpop.f32.mrf.mxu1 }
 0x1c4   : > { %v883_v60 = vmul.f32 1.442695, %v866_v57  ;;  %1491 = vst [vmem:[%s2219_s30 + $0x38] sm:$0xff] %v2236_v58  ;;  %v799_v61 = vadd.f32 %v798_v59, %v2214_v45 }
 0x1c5   : > { %v800_v62 = vpop.f32.mrf.mxu1 }
 0x1c6   : > { %1883 = vpow2.f32 %v883_v60  ;;  %v867_v63 = vmul.f32 0.5, %v799_v61  ;;  %1507 = vst [vmem:[%s2219_s30 + $0x40] sm:$0xff] %v799_v61  ;;  %v2243_v0 = vadd.f32 %v800_v62, %v2212_v44  ;;  %v917_v62 = vld [vmem:[%s2256_s15 + $0x20] sm:$0xff] }
 0x1c7   : > { %v802_v1 = vpop.f32.mrf.mxu1 }
 0x1c8   : > { %v885_v2 = vmul.f32 1.442695, %v867_v63  ;;  %1492 = vst [vmem:[%s2219_s30 + $0x50] sm:$0xff] %v2243_v0  ;;  %v803_v3 = vadd.f32 %v802_v1, %v2214_v45 }
 0x1c9   : > { %v806_v4 = vpop.f32.mrf.mxu1 }
 0x1ca   : > { %1885 = vpow2.f32 %v885_v2  ;;  %v868_v5 = vmul.f32 0.5, %v803_v3  ;;  %1508 = vst [vmem:[%s2219_s30 + $0x58] sm:$0xff] %v803_v3  ;;  %v2251_v6 = vadd.f32 %v806_v4, %v2212_v44 }
 0x1cb   : > { %v808_v7 = vpop.f32.mrf.mxu1 }
 0x1cc   : > { %v887_v8 = vmul.f32 1.442695, %v868_v5  ;;  %1493 = vst [vmem:[%s2219_s30 + $0x68] sm:$0xff] %v2251_v6  ;;  %v809_v9 = vadd.f32 %v808_v7, %v2214_v45  ;;  %v918_v5 = vld [vmem:[%s2256_s15 + $0x28] sm:$0xff] }
 0x1cd   : > { %v810_v10 = vpop.f32.mrf.mxu1 }
 0x1ce   : > { %1887 = vpow2.f32 %v887_v8  ;;  %v869_v11 = vmul.f32 0.5, %v809_v9  ;;  %1509 = vst [vmem:[%s2219_s30 + $0x70] sm:$0xff] %v809_v9  ;;  %v2263_v12 = vadd.f32 %v810_v10, %v2212_v44 }
 0x1cf   : > { %v1882_v14 = vpop.eup %1881  ;;  %v812_v15 = vpop.f32.mrf.mxu1 }
 0x1d0   : > { %v889_v16 = vmul.f32 1.442695, %v869_v11  ;;  %1494 = vst [vmem:[%s2219_s30 + $0x80] sm:$0xff] %v2263_v12  ;;  %v813_v17 = vadd.f32 %v812_v15, %v2214_v45  ;;  %v929_v20 = vmul.f32 %v1882_v14, %v913_v13 }
 0x1d1   : > { %v816_v18 = vpop.f32.mrf.mxu1 }
 0x1d2   : > { %1889 = vpow2.f32 %v889_v16  ;;  %v870_v21 = vmul.f32 0.5, %v813_v17  ;;  %1510 = vst [vmem:[%s2219_s30 + $0x88] sm:$0xff] %v813_v17  ;;  %v2272_v22 = vadd.f32 %v816_v18, %v2212_v44  ;;  %v945_v29 = vadd.f32 %v929_v20, %v2222_v47  ;;  %v916_v47 = vld [vmem:[%s2256_s15 + $0x18] sm:$0xff] }
 0x1d3   : > { %v1884_v23 = vpop.eup %1883  ;;  %v818_v24 = vpop.f32.mrf.mxu1 }
 0x1d4   : > { %v891_v25 = vmul.f32 1.442695, %v870_v21  ;;  %1495 = vst [vmem:[%s2219_s30 + $0x98] sm:$0xff] %v2272_v22  ;;  %v819_v26 = vadd.f32 %v818_v24, %v2214_v45  ;;  %v930_v27 = vmul.f32 %v1884_v23, %v914_v19  ;;  %v919_v19 = vld [vmem:[%s2256_s15 + $0x30] sm:$0xff] }
 0x1d5   : > { %v820_v28 = vpop.f32.mrf.mxu1 }
 0x1d6   : > { %1891 = vpow2.f32 %v891_v25  ;;  %v871_v30 = vmul.f32 0.5, %v819_v26  ;;  %1511 = vst [vmem:[%s2219_s30 + $0xa0] sm:$0xff] %v819_v26  ;;  %v2280_v31 = vadd.f32 %v820_v28, %v2212_v44  ;;  %v946_v32 = vadd.f32 %v930_v27, %v2229_v52  ;;  %v920_v26 = vld [vmem:[%s2256_s15 + $0x38] sm:$0xff] }
 0x1d7   : > { %v1886_v39 = vpop.eup %1885  ;;  %v822_v40 = vpop.f32.mrf.mxu1 }
 0x1d8   : > { %v893_v41 = vmul.f32 1.442695, %v871_v30  ;;  %1496 = vst [vmem:[%s2219_s30 + $0xb0] sm:$0xff] %v2280_v31  ;;  %v823_v42 = vadd.f32 %v822_v40, %v2214_v45  ;;  %v961_v43 = vpack.c.bf16 %v946_v32, %v945_v29  ;;  %v931_v48 = vmul.f32 %v1886_v39, %v915_v33 }
 0x1d9   : > { %v826_v46 = vpop.f32.mrf.mxu1 }
 0x1da   : > { %1893 = vpow2.f32 %v893_v41  ;;  %v872_v49 = vmul.f32 0.5, %v823_v42  ;;  %1512 = vst [vmem:[%s2219_s30 + $0xb8] sm:$0xff] %v823_v42  ;;  %v2290_v50 = vadd.f32 %v826_v46, %v2212_v44  ;;  %1751 = vmatprep.mubr.bf16.mxu0 %v961_v43  ;;  %v947_v57 = vadd.f32 %v931_v48, %v2236_v58  ;;  %v921_v43 = vld [vmem:[%s2256_s15 + $0x40] sm:$0xff] }
 0x1db   : > { %v1888_v51 = vpop.eup %1887  ;;  %v828_v52 = vpop.f32.mrf.mxu1 }
 0x1dc   : > { %v895_v53 = vmul.f32 1.442695, %v872_v49  ;;  %1497 = vst [vmem:[%s2219_s30 + $0xc8] sm:$0xff] %v2290_v50  ;;  %v829_v54 = vadd.f32 %v828_v52, %v2214_v45  ;;  %v932_v55 = vmul.f32 %v1888_v51, %v916_v47  ;;  %v922_v52 = vld [vmem:[%s2256_s15 + $0x48] sm:$0xff] }
 0x1dd   : > { %v830_v56 = vpop.f32.mrf.mxu1 }
 0x1de   : > { %1895 = vpow2.f32 %v895_v53  ;;  %v873_v59 = vmul.f32 0.5, %v829_v54  ;;  %1513 = vst [vmem:[%s2219_s30 + $0xd0] sm:$0xff] %v829_v54  ;;  %v2298_v60 = vadd.f32 %v830_v56, %v2212_v44  ;;  %v948_v61 = vadd.f32 %v932_v55, %v2243_v0 }
 0x1df   : > { %v1890_v63 = vpop.eup %1889  ;;  %v832_v1 = vpop.f32.mrf.mxu1 }
 0x1e0   : > { %v897_v2 = vmul.f32 1.442695, %v873_v59  ;;  %1498 = vst [vmem:[%s2219_s30 + $0xe0] sm:$0xff] %v2298_v60  ;;  %v833_v3 = vadd.f32 %v832_v1, %v2214_v45  ;;  %v962_v4 = vpack.c.bf16 %v948_v61, %v947_v57  ;;  %v933_v7 = vmul.f32 %v1890_v63, %v917_v62 }
 0x1e1   : > { %v836_v58 = vpop.f32.mrf.mxu1 }
 0x1e2   : > { %1897 = vpow2.f32 %v897_v2  ;;  %v874_v8 = vmul.f32 0.5, %v833_v3  ;;  %1514 = vst [vmem:[%s2219_s30 + $0xe8] sm:$0xff] %v833_v3  ;;  %v2308_v9 = vadd.f32 %v836_v58, %v2212_v44  ;;  %1752 = vmatmul.mubr.bf16.vlgmr.msra.gmra.mxu0 %v962_v4  ;;  %v949_v16 = vadd.f32 %v933_v7, %v2251_v6  ;;  %v923_v4 = vld [vmem:[%s2256_s15 + $0x50] sm:$0xff] }
 0x1e3   : > { %v1892_v0 = vpop.eup %1891  ;;  %v838_v10 = vpop.f32.mrf.mxu1  ;;  %1768 = vmatpush3.bf16.msra.mxu0 %v2175_v34 }
 0x1e4   : > { %v899_v11 = vmul.f32 1.442695, %v874_v8  ;;  %1499 = vst [vmem:[%s2219_s30 + $0xf8] sm:$0xff] %v2308_v9  ;;  %v839_v13 = vadd.f32 %v838_v10, %v2214_v45  ;;  %v934_v14 = vmul.f32 %v1892_v0, %v918_v5  ;;  %1769 = vmatprep.subr.bf16.mxu0 %v2181_v35  ;;  %v924_v8 = vld [vmem:[%s2256_s15 + $0x58] sm:$0xff] }
 0x1e5   : > { %v840_v15 = vpop.f32.mrf.mxu1 }
 0x1e6   : > { %1899 = vpow2.f32 %v899_v11  ;;  %v875_v17 = vmul.f32 0.5, %v839_v13  ;;  %1515 = vst [vmem:[%s2219_s30 + $0x100] sm:$0xff] %v839_v13  ;;  %v2318_v18 = vadd.f32 %v840_v15, %v2212_v44  ;;  %v950_v34 = vadd.f32 %v934_v14, %v2263_v12 }
 0x1e7   : > { %v1894_v20 = vpop.eup %1893  ;;  %v842_v21 = vpop.f32.mrf.mxu1  ;;  %1770 = vmatpush3.bf16.msra.mxu0 %v2181_v35 }
 0x1e8   : > { %v901_v23 = vmul.f32 1.442695, %v875_v17  ;;  %1500 = vst [vmem:[%s2219_s30 + $0x110] sm:$0xff] %v2318_v18  ;;  %v843_v6 = vadd.f32 %v842_v21, %v2214_v45  ;;  %v963_v24 = vpack.c.bf16 %v950_v34, %v949_v16  ;;  %1771 = vmatprep.subr.bf16.mxu0 %v2189_v36  ;;  %v935_v27 = vmul.f32 %v1894_v20, %v919_v19  ;;  %v926_v16 = vld [vmem:[%s2256_s15 + $0x68] sm:$0xff] }
 0x1e9   : > { %v846_v25 = vpop.f32.mrf.mxu1 }
 0x1ea   : > { %1901 = vpow2.f32 %v901_v23  ;;  %v876_v28 = vmul.f32 0.5, %v843_v6  ;;  %1516 = vst [vmem:[%s2219_s30 + $0x118] sm:$0xff] %v843_v6  ;;  %v2330_v12 = vadd.f32 %v846_v25, %v2212_v44  ;;  %1755 = vmatprep.mubr.bf16.mxu0 %v963_v24  ;;  %v951_v40 = vadd.f32 %v935_v27, %v2272_v22  ;;  %v927_v6 = vld [vmem:[%s2256_s15 + $0x70] sm:$0xff]  ;;  %v928_v25 = vld [vmem:[%s2256_s15 + $0x78] sm:$0xff] }
 0x1eb   : > { %v1896_v35 = vpop.eup %1895  ;;  %v848_v29 = vpop.f32.mrf.mxu1  ;;  %1772 = vmatpush3.bf16.msra.mxu0 %v2189_v36 }
 0x1ec   : > { %v903_v30 = vmul.f32 1.442695, %v876_v28  ;;  %1501 = vst [vmem:[%s2219_s30 + $0x128] sm:$0xff] %v2330_v12  ;;  %v849_v32 = vadd.f32 %v848_v29, %v2214_v45  ;;  %v936_v33 = vmul.f32 %v1896_v35, %v920_v26  ;;  %1773 = vmatprep.subr.bf16.mxu0 %v2196_v37  ;;  %v1878_v29 = vld [vmem:[%s2509_s7 + $0x10] sm:$0xff]  }
 0x1ed   : > { %v850_v39 = vpop.f32.mrf.mxu1  ;;  %1804 = vmatprep.subr.bf16.mxu1 %v1878_v29 }
 0x1ee   : > { %1903 = vpow2.f32 %v903_v30  ;;  %v877_v41 = vmul.f32 0.5, %v849_v32  ;;  %1517 = vst [vmem:[%s2219_s30 + $0x130] sm:$0xff] %v849_v32  ;;  %v851_v42 = vadd.f32 %v850_v39, %v2212_v44  ;;  %v952_v36 = vadd.f32 %v936_v33, %v2280_v31  ;;  %1812 = vmatpush3.bf16.msra.mxu1 %v1878_v29  ;;  %v1880_v30 = vld [vmem:[%s2509_s7] sm:$0xff]  }
 0x1ef   : > { %v1898_v46 = vpop.eup %1897  ;;  %v852_v47 = vpop.f32.mrf.mxu1  ;;  %1774 = vmatpush3.bf16.msra.mxu0 %v2196_v37  ;;  %v1635_v39 = vld [vmem:[%s2508_s6] ss:$0 sm:$0xff] }
 0x1f0   : > { %v905_v48 = vmul.f32 1.442695, %v877_v41  ;;  %1502 = vst [vmem:[%s2219_s30 + $0x140] sm:$0xff] %v851_v42  ;;  %v853_v49 = vadd.f32 %v852_v47, %v2214_v45  ;;  %v964_v22 = vpack.c.bf16 %v952_v36, %v951_v40  ;;  %1775 = vmatprep.subr.bf16.mxu0 %v2203_v38  ;;  %v937_v53 = vmul.f32 %v1898_v46, %v921_v43 }
 0x1f1   : > { %v856_v51 = vpop.f32.mrf.mxu1 }
 0x1f2   : > { %1905 = vpow2.f32 %v905_v48  ;;  %v878_v54 = vmul.f32 0.5, %v853_v49  ;;  %1518 = vst [vmem:[%s2219_s30 + $0x148] sm:$0xff] %v853_v49  ;;  %v857_v31 = vadd.f32 %v856_v51, %v2212_v44  ;;  %1756 = vmatmul.mubr.bf16.gmra.mxu0 %v964_v22  ;;  %v953_v62 = vadd.f32 %v937_v53, %v2290_v50 }
 0x1f3   : > { %v1900_v55 = vpop.eup %1899  ;;  %v858_v37 = vpop.f32.mrf.mxu1  ;;  %1776 = vmatpush3.bf16.msra.mxu0 %v2203_v38 }
 0x1f4   : > { %v907_v56 = vmul.f32 1.442695, %v878_v54  ;;  %1503 = vst [vmem:[%s2219_s30 + $0x158] sm:$0xff] %v857_v31  ;;  %v859_v57 = vadd.f32 %v858_v37, %v2214_v45  ;;  %v938_v59 = vmul.f32 %v1900_v55, %v922_v52  ;;  %1777 = vmatprep.subr.bf16.mxu0 %v1878_v29 }
 0x1f5   : > { %v860_v61 = vpop.f32.mrf.mxu1 }
 0x1f6   : > { %1907 = vpow2.f32 %v907_v56  ;;  %v879_v63 = vmul.f32 0.5, %v859_v57  ;;  %1519 = vst [vmem:[%s2219_s30 + $0x160] sm:$0xff] %v859_v57  ;;  %v861_v1 = vadd.f32 %v860_v61, %v2212_v44  ;;  %v954_v2 = vadd.f32 %v938_v59, %v2298_v60 }
 0x1f7   : > { %v1902_v3 = vpop.eup %1901  ;;  %v862_v38 = vpop.f32.mrf.mxu1  ;;  %1778 = vmatpush3.bf16.msra.mxu0 %v1878_v29 }
 0x1f8   : > { %v909_v58 = vmul.f32 1.442695, %v879_v63  ;;  %1504 = vst [vmem:[%s2219_s30 + $0x170] sm:$0xff] %v861_v1  ;;  %v863_v5 = vadd.f32 %v862_v38, %v2214_v45  ;;  %v965_v7 = vpack.c.bf16 %v954_v2, %v953_v62  ;;  %v939_v0 = vmul.f32 %v1902_v3, %v923_v4  ;;  %v925_v45 = vld [vmem:[%s2256_s15 + $0x60] sm:$0xff] }
 0x1fa   : > { %1909 = vpow2.f32 %v909_v58  ;;  %v880_v50 = vmul.f32 0.5, %v863_v5  ;;  %1520 = vst [vmem:[%s2219_s30 + $0x178] sm:$0xff] %v863_v5  ;;  %1759 = vmatprep.mubr.bf16.mxu0 %v965_v7  ;;  %v955_v11 = vadd.f32 %v939_v0, %v2308_v9 }
 0x1fb   : > { %v1904_v10 = vpop.eup %1903 }
 0x1fc   : > { %v911_v44 = vmul.f32 1.442695, %v880_v50  ;;  %v940_v60 = vmul.f32 %v1904_v10, %v924_v8 }
 0x1fe   : > { %1911 = vpow2.f32 %v911_v44  ;;  %v956_v13 = vadd.f32 %v940_v60, %v2318_v18 }
 0x1ff   : > { %v1906_v14 = vpop.eup %1905 }
 0x200   : > { %v966_v15 = vpack.c.bf16 %v956_v13, %v955_v11  ;;  %v941_v17 = vmul.f32 %v1906_v14, %v925_v45 }
 0x202   : > { %1760 = vmatmul.mubr.bf16.gmra.mxu0 %v966_v15  ;;  %v957_v20 = vadd.f32 %v941_v17, %v2330_v12  ;;  %v1879_v12 = vld [vmem:[%s2509_s7 + $0x8] sm:$0xff]  }
 0x203   : > { %v1908_v34 = vpop.eup %1907  ;;  %1779 = vmatprep.subr.bf16.mxu0 %v1879_v12  ;;  %1805 = vmatprep.subr.bf16.mxu1 %v1879_v12 }
 0x204   : > { %v942_v19 = vmul.f32 %v1908_v34, %v926_v16  ;;  %1780 = vmatpush3.bf16.msra.mxu0 %v1879_v12  ;;  %1813 = vmatpush3.bf16.msra.mxu1 %v1879_v12 }
 0x205   : > { %1781 = vmatprep.subr.bf16.mxu0 %v1880_v30  ;;  %1806 = vmatprep.subr.bf16.mxu1 %v1880_v30 }
 0x206   : > { %v958_v21 = vadd.f32 %v942_v19, %v851_v42 }
 0x207   : > { %v1910_v23 = vpop.eup %1909 }
 0x208   : > { %v967_v24 = vpack.c.bf16 %v958_v21, %v957_v20  ;;  %v943_v26 = vmul.f32 %v1910_v23, %v927_v6  ;;  %1782 = vmatpush3.bf16.msra.mxu0 %v1880_v30  ;;  %1814 = vmatpush3.bf16.msra.mxu1 %v1880_v30 }
 0x20a   : > { %1763 = vmatprep.mubr.bf16.mxu0 %v967_v24  ;;  %v959_v18 = vadd.f32 %v943_v26, %v857_v31 }
 0x20b   : > { %v1912_v9 = vpop.eup %1911 }
 0x20c   : > { %v944_v27 = vmul.f32 %v1912_v9, %v928_v25 }
 0x20e   : > { %v960_v28 = vadd.f32 %v944_v27, %v861_v1  ;;  %v1644_v27 = vld [vmem:[%s2510_s8] ss:$0 sm:$0xff] }
 0x210   : > { %v968_v35 = vpack.c.bf16 %v960_v28, %v959_v18 }
 0x212   : > { %1764 = vmatmul.mubr.bf16.gmra.mxu0 %v968_v35 }
 0x2a2   : > { %v1753_v32 = vpop.f32.mrf.mxu0 }
 0x2a3   : > { %v1083_v36 = vadd.f32 %v1753_v32, %v1635_v39 }
 0x2a4   : > { %v1074_v33 = vpop.f32.mrf.mxu0 }
 0x2a5   : > { %v1075_v41 = vadd.f32 %v1635_v39, %v1074_v33  ;;  %v1139_v22 = vmax.f32 %v1083_v36, 0.0 }
 0x2a6   : > { %v1754_v40 = vpop.f32.mrf.mxu0 }
 0x2a7   : > { %v1086_v42 = vadd.f32 %v1754_v40, %v1635_v39  ;;  %v1137_v48 = vmax.f32 %v1075_v41, 0.0 }
 0x2a8   : > { %v1077_v43 = vpop.f32.mrf.mxu0 }
 0x2a9   : > { %v1078_v46 = vadd.f32 %v1635_v39, %v1077_v43  ;;  %v1140_v47 = vmax.f32 %v1086_v42, 0.0 }
 0x2ab   : > { %v1138_v49 = vmax.f32 %v1078_v46, 0.0  ;;  %v1154_v52 = vpack.c.bf16 %v1140_v47, %v1139_v22 }
 0x2ad   : > { %v1153_v51 = vpack.c.bf16 %v1138_v49, %v1137_v48 }
 0x2af   : > { %1783 = vmatprep.mubr.bf16.mxu0 %v1153_v51 }
 0x2b0   : > { %1784 = vmatmul.mubr.bf16.vlgmr.msra.gmra.mxu0 %v1154_v52 }
 0x2b2   : > { %v1757_v53 = vpop.f32.mrf.mxu0 }
 0x2b3   : > { %v1099_v56 = vadd.f32 %v1757_v53, %v1635_v39 }
 0x2b4   : > { %v1090_v54 = vpop.f32.mrf.mxu0 }
 0x2b5   : > { %v1091_v55 = vadd.f32 %v1635_v39, %v1090_v54  ;;  %v1143_v1 = vmax.f32 %v1099_v56, 0.0 }
 0x2b6   : > { %v1758_v31 = vpop.f32.mrf.mxu0 }
 0x2b7   : > { %v1102_v37 = vadd.f32 %v1758_v31, %v1635_v39  ;;  %v1141_v62 = vmax.f32 %v1091_v55, 0.0 }
 0x2b8   : > { %v1093_v57 = vpop.f32.mrf.mxu0 }
 0x2b9   : > { %v1094_v59 = vadd.f32 %v1635_v39, %v1093_v57  ;;  %v1144_v61 = vmax.f32 %v1102_v37, 0.0 }
 0x2bb   : > { %v1142_v63 = vmax.f32 %v1094_v59, 0.0  ;;  %v1156_v3 = vpack.c.bf16 %v1144_v61, %v1143_v1 }
 0x2bd   : > { %v1155_v2 = vpack.c.bf16 %v1142_v63, %v1141_v62 }
 0x2bf   : > { %1787 = vmatprep.mubr.bf16.mxu0 %v1155_v2 }
 0x2c0   : > { %1788 = vmatmul.mubr.bf16.gmra.mxu0 %v1156_v3 }
 0x2c2   : > { %v1761_v38 = vpop.f32.mrf.mxu0 }
 0x2c3   : > { %v1115_v8 = vadd.f32 %v1761_v38, %v1635_v39 }
 0x2c4   : > { %v1106_v4 = vpop.f32.mrf.mxu0 }
 0x2c5   : > { %v1107_v5 = vadd.f32 %v1635_v39, %v1106_v4  ;;  %v1147_v11 = vmax.f32 %v1115_v8, 0.0 }
 0x2c6   : > { %v1762_v58 = vpop.f32.mrf.mxu0 }
 0x2c7   : > { %v1118_v7 = vadd.f32 %v1762_v58, %v1635_v39  ;;  %v1145_v44 = vmax.f32 %v1107_v5, 0.0 }
 0x2c8   : > { %v1109_v50 = vpop.f32.mrf.mxu0 }
 0x2c9   : > { %v1110_v0 = vadd.f32 %v1635_v39, %v1109_v50  ;;  %v1148_v10 = vmax.f32 %v1118_v7, 0.0 }
 0x2cb   : > { %v1146_v60 = vmax.f32 %v1110_v0, 0.0  ;;  %v1158_v14 = vpack.c.bf16 %v1148_v10, %v1147_v11 }
 0x2cd   : > { %v1157_v13 = vpack.c.bf16 %v1146_v60, %v1145_v44 }
 0x2cf   : > { %1791 = vmatprep.mubr.bf16.mxu1 %v1157_v13 }
 0x2d0   : > { %1792 = vmatmul.mubr.bf16.vlgmr.msra.gmra.mxu1 %v1158_v14 }
 0x2d2   : > { %v1765_v45 = vpop.f32.mrf.mxu0 }
 0x2d3   : > { %v1131_v19 = vadd.f32 %v1765_v45, %v1635_v39 }
 0x2d4   : > { %v1122_v15 = vpop.f32.mrf.mxu0 }
 0x2d5   : > { %v1123_v17 = vadd.f32 %v1635_v39, %v1122_v15  ;;  %v1151_v25 = vmax.f32 %v1131_v19, 0.0 }
 0x2d6   : > { %v1766_v16 = vpop.f32.mrf.mxu0 }
 0x2d7   : > { %v1134_v34 = vadd.f32 %v1766_v16, %v1635_v39  ;;  %v1149_v6 = vmax.f32 %v1123_v17, 0.0 }
 0x2d8   : > { %v1125_v20 = vpop.f32.mrf.mxu0 }
 0x2d9   : > { %v1126_v21 = vadd.f32 %v1635_v39, %v1125_v20  ;;  %v1152_v23 = vmax.f32 %v1134_v34, 0.0 }
 0x2db   : > { %v1150_v24 = vmax.f32 %v1126_v21, 0.0  ;;  %v1160_v9 = vpack.c.bf16 %v1152_v23, %v1151_v25 }
 0x2dd   : > { %v1159_v26 = vpack.c.bf16 %v1150_v24, %v1149_v6 }
 0x2df   : > { %1795 = vmatprep.mubr.bf16.mxu1 %v1159_v26 }
 0x2e0   : > { %1796 = vmatmul.mubr.bf16.gmra.mxu1 %v1160_v9 }
 0x370   : > { %v1785_v18 = vpop.f32.mrf.mxu0 }
 0x371   : > { %v1275_v28 = vadd.f32 %v1785_v18, %v1644_v27 }
 0x372   : > { %v1266_v35 = vpop.f32.mrf.mxu0 }
 0x373   : > { %v1267_v29 = vadd.f32 %v1644_v27, %v1266_v35  ;;  %1333 = vmax.xlane.f32.xlu1 %v1275_v28 }
 0x374   : > { %v1786_v12 = vpop.f32.mrf.mxu0 }
 0x375   : > { %v1278_v30 = vadd.f32 %v1786_v12, %v1644_v27  ;;  %1329 = vmax.xlane.f32.xlu0 %v1267_v29 }
 0x376   : > { %v1269_v32 = vpop.f32.mrf.mxu0 }
 0x377   : > { %v1270_v33 = vadd.f32 %v1644_v27, %v1269_v32  ;;  %1335 = vmax.xlane.f32.xlu1 %v1278_v30 }
 0x379   : > { %1331 = vmax.xlane.f32.xlu0 %v1270_v33 }
 0x380   : > { %v1789_v39 = vpop.f32.mrf.mxu0 }
 0x381   : > { %v1291_v40 = vadd.f32 %v1789_v39, %v1644_v27 }
 0x382   : > { %v1282_v41 = vpop.f32.mrf.mxu0 }
 0x383   : > { %1341 = vmax.xlane.f32.xlu0 %v1291_v40  ;;  %v1283_v36 = vadd.f32 %v1644_v27, %v1282_v41 }
 0x384   : > { %v1790_v42 = vpop.f32.mrf.mxu0 }
 0x385   : > { %v1294_v43 = vadd.f32 %v1790_v42, %v1644_v27 }
 0x386   : > { %v1285_v46 = vpop.f32.mrf.mxu0 }
 0x387   : > { %1343 = vmax.xlane.f32.xlu1 %v1294_v43  ;;  %1337 = vmax.xlane.f32.xlu0 %v1283_v36  ;;  %v2383_v47 = vadd.f32 %v1644_v27, %v1285_v46 }
 0x38b   : > { %1339 = vmax.xlane.f32.xlu1 %v2383_v47 }
 0x390   : > { %v1793_v48 = vpop.f32.mrf.mxu1 }
 0x391   : > { %v2386_v49 = vadd.f32 %v1793_v48, %v1644_v27 }
 0x392   : > { %v1298_v22 = vpop.f32.mrf.mxu1 }
 0x393   : > { %1349 = vmax.xlane.f32.xlu0 %v2386_v49  ;;  %v2389_v52 = vadd.f32 %v1644_v27, %v1298_v22 }
 0x394   : > { %v1794_v51 = vpop.f32.mrf.mxu1 }
 0x395   : > { %v2391_v53 = vadd.f32 %v1794_v51, %v1644_v27 }
 0x396   : > { %v1301_v54 = vpop.f32.mrf.mxu1 }
 0x397   : > { %1351 = vmax.xlane.f32.xlu1 %v2391_v53  ;;  %1345 = vmax.xlane.f32.xlu0 %v2389_v52  ;;  %v2395_v31 = vadd.f32 %v1644_v27, %v1301_v54 }
 0x39b   : > { %1347 = vmax.xlane.f32.xlu1 %v2395_v31 }
 0x3a0   : > { %v1797_v55 = vpop.f32.mrf.mxu1 }
 0x3a1   : > { %v2401_v61 = vadd.f32 %v1797_v55, %v1644_v27 }
 0x3a2   : > { %v1314_v37 = vpop.f32.mrf.mxu1 }
 0x3a3   : > { %v2398_v56 = vadd.f32 %v1644_v27, %v1314_v37 }
 0x3a4   : > { %v1798_v57 = vpop.f32.mrf.mxu1 }
 0x3a5   : > { %1353 = vmax.xlane.f32.xlu0 %v2398_v56  ;;  %v2407_v63 = vadd.f32 %v1798_v57, %v1644_v27 }
 0x3a6   : > { %v1317_v59 = vpop.f32.mrf.mxu1 }
 0x3a7   : > { %v2403_v62 = vadd.f32 %v1644_v27, %v1317_v59 }
 0x3a9   : > { %1355 = vmax.xlane.f32.xlu1 %v2403_v62  ;;  %1357 = vmax.xlane.f32.xlu0 %v2401_v61 }
 0x3ad   : > { %1359 = vmax.xlane.f32.xlu1 %v2407_v63 }
 0x3fc   : > { %v1334_v1 = vpop.xlane.xlu1 %1333 }
 0x3fd   : > { %v1363_v2 = vsub.f32 %v1275_v28, %v1334_v1 }
 0x3fe   : > { %v1330_v3 = vpop.xlane.xlu0 %1329 }
 0x3ff   : > { %v1381_v38 = vmul.f32 1.442695, %v1363_v2  ;;  %v1361_v4 = vsub.f32 %v1267_v29, %v1330_v3 }
 0x400   : > { %v1336_v58 = vpop.xlane.xlu1 %1335 }
 0x401   : > { %1913 = vpow2.f32 %v1381_v38  ;;  %v1377_v5 = vmul.f32 1.442695, %v1361_v4  ;;  %v1364_v7 = vsub.f32 %v1278_v30, %v1336_v58 }
 0x402   : > { %v1332_v8 = vpop.xlane.xlu0 %1331 }
 0x403   : > { %v1383_v50 = vmul.f32 1.442695, %v1364_v7  ;;  %v1362_v0 = vsub.f32 %v1270_v33, %v1332_v8  ;;  %1915 = vpow2.f32 %v1377_v5 }
 0x405   : > { %1917 = vpow2.f32 %v1383_v50  ;;  %v1379_v10 = vmul.f32 1.442695, %v1362_v0 }
 0x407   : > { %1919 = vpow2.f32 %v1379_v10 }
 0x40c   : > { %v1342_v44 = vpop.xlane.xlu0 %1341 }
 0x40d   : > { %v1367_v60 = vsub.f32 %v1291_v40, %v1342_v44 }
 0x40e   : > { %v2410_v11 = vpop.eup %1913 }
 0x40f   : > { %v1389_v13 = vmul.f32 1.442695, %v1367_v60  ;;  %1413 = vadd.xlane.f32.xlu0 %v2410_v11 }
 0x410   : > { %v1344_v14 = vpop.xlane.xlu1 %1343  ;;  %v1338_v45 = vpop.xlane.xlu0 %1337 }
 0x411   : > { %v2413_v15 = vpop.eup %1915  ;;  %1921 = vpow2.f32 %v1389_v13  ;;  %v1368_v16 = vsub.f32 %v1294_v43, %v1344_v14  ;;  %v1365_v17 = vsub.f32 %v1283_v36, %v1338_v45 }
 0x412   : > { %v2415_v34 = vpop.eup %1917 }
 0x413   : > { %v1391_v19 = vmul.f32 1.442695, %v1368_v16  ;;  %v1385_v20 = vmul.f32 1.442695, %v1365_v17  ;;  %1415 = vadd.xlane.f32.xlu1 %v2415_v34  ;;  %1409 = vadd.xlane.f32.xlu0 %v2413_v15 }
 0x414   : > { %v1340_v21 = vpop.xlane.xlu1 %1339  ;;  %v2420_v6 = vpop.eup %1919 }
 0x415   : > { %1923 = vpow2.f32 %v1391_v19  ;;  %v1366_v23 = vsub.f32 %v2383_v47, %v1340_v21 }
 0x416   : > { %1925 = vpow2.f32 %v1385_v20 }
 0x417   : > { %v1387_v24 = vmul.f32 1.442695, %v1366_v23  ;;  %1411 = vadd.xlane.f32.xlu1 %v2420_v6 }
 0x419   : > { %1927 = vpow2.f32 %v1387_v24 }
 0x41c   : > { %v1350_v25 = vpop.xlane.xlu0 %1349 }
 0x41d   : > { %v1371_v26 = vsub.f32 %v2386_v49, %v1350_v25 }
 0x41e   : > { %v2424_v9 = vpop.eup %1921 }
 0x41f   : > { %v1397_v27 = vmul.f32 1.442695, %v1371_v26  ;;  %1421 = vadd.xlane.f32.xlu0 %v2424_v9 }
 0x420   : > { %v1352_v18 = vpop.xlane.xlu1 %1351  ;;  %v1346_v28 = vpop.xlane.xlu0 %1345 }
 0x421   : > { %1929 = vpow2.f32 %v1397_v27  ;;  %v1372_v35 = vsub.f32 %v2391_v53, %v1352_v18  ;;  %v1369_v29 = vsub.f32 %v2389_v52, %v1346_v28 }
 0x422   : > { %v2429_v12 = vpop.eup %1923 }
 0x423   : > { %v2431_v30 = vpop.eup %1925  ;;  %v1399_v32 = vmul.f32 1.442695, %v1372_v35  ;;  %v1393_v33 = vmul.f32 1.442695, %v1369_v29  ;;  %1423 = vadd.xlane.f32.xlu1 %v2429_v12 }
 0x424   : > { %1417 = vadd.xlane.f32.xlu0 %v2431_v30  ;;  %v1348_v39 = vpop.xlane.xlu1 %1347 }
 0x425   : > { %1931 = vpow2.f32 %v1399_v32  ;;  %v1370_v40 = vsub.f32 %v2395_v31, %v1348_v39 }
 0x426   : > { %v2436_v41 = vpop.eup %1927  ;;  %1933 = vpow2.f32 %v1393_v33 }
 0x427   : > { %v1395_v42 = vmul.f32 1.442695, %v1370_v40  ;;  %1419 = vadd.xlane.f32.xlu1 %v2436_v41 }
 0x429   : > { %1935 = vpow2.f32 %v1395_v42 }
 0x42e   : > { %v2439_v36 = vpop.eup %1929  ;;  %v1354_v43 = vpop.xlane.xlu0 %1353 }
 0x42f   : > { %v1373_v46 = vsub.f32 %v2398_v56, %v1354_v43  ;;  %1429 = vadd.xlane.f32.xlu0 %v2439_v36 }
 0x431   : > { %v1401_v47 = vmul.f32 1.442695, %v1373_v46 }
 0x432   : > { %v2443_v48 = vpop.eup %1931  ;;  %v1356_v49 = vpop.xlane.xlu1 %1355 }
 0x433   : > { %v1358_v22 = vpop.xlane.xlu0 %1357  ;;  %v2445_v51 = vpop.eup %1933  ;;  %1937 = vpow2.f32 %v1401_v47  ;;  %v1374_v52 = vsub.f32 %v2403_v62, %v1356_v49  ;;  %1431 = vadd.xlane.f32.xlu1 %v2443_v48 }
 0x434   : > { %v1375_v53 = vsub.f32 %v2401_v61, %v1358_v22  ;;  %1425 = vadd.xlane.f32.xlu0 %v2445_v51 }
 0x435   : > { %v1403_v54 = vmul.f32 1.442695, %v1374_v52 }
 0x436   : > { %v1405_v31 = vmul.f32 1.442695, %v1375_v53  ;;  %v2451_v55 = vpop.eup %1935  ;;  %v1360_v37 = vpop.xlane.xlu1 %1359 }
 0x437   : > { %1939 = vpow2.f32 %v1403_v54  ;;  %v1376_v56 = vsub.f32 %v2407_v63, %v1360_v37  ;;  %1427 = vadd.xlane.f32.xlu1 %v2451_v55 }
 0x438   : > { %1941 = vpow2.f32 %v1405_v31 }
 0x439   : > { %v1407_v57 = vmul.f32 1.442695, %v1376_v56 }
 0x43b   : > { %1943 = vpow2.f32 %v1407_v57 }
 0x440   : > { %v2455_v59 = vpop.eup %1937 }
 0x441   : > { %1433 = vadd.xlane.f32.xlu0 %v2455_v59 }
 0x444   : > { %v2458_v61 = vpop.eup %1939 }
 0x445   : > { %v2460_v62 = vpop.eup %1941  ;;  %1435 = vadd.xlane.f32.xlu1 %v2458_v61 }
 0x446   : > { %1437 = vadd.xlane.f32.xlu0 %v2460_v62 }
 0x448   : > { %v2464_v1 = vpop.eup %1943 }
 0x449   : > { %1439 = vadd.xlane.f32.xlu1 %v2464_v1 }
 0x498   : > { %v1414_v63 = vpop.xlane.xlu0 %1413 }
 0x499   : > { %1945 = vrcp.f32 %v1414_v63 }
 0x49c   : > { %v1416_v2 = vpop.xlane.xlu1 %1415  ;;  %v1410_v3 = vpop.xlane.xlu0 %1409 }
 0x49d   : > { %1947 = vrcp.f32 %v1416_v2 }
 0x49e   : > { %1949 = vrcp.f32 %v1410_v3 }
 0x4a0   : > { %v1412_v38 = vpop.xlane.xlu1 %1411 }
 0x4a1   : > { %1951 = vrcp.f32 %v1412_v38 }
 0x4a6   : > { %v1946_v4 = vpop.eup %1945 }
 0x4a7   : > { %v1459_v58 = vmul.f32 %v1946_v4, %v2410_v11 }
 0x4a8   : > { %v1422_v5 = vpop.xlane.xlu0 %1421 }
 0x4a9   : > { %1475 = vst [vmem:[%s2219_s30 + $0x30] sm:$0xff] %v1459_v58  ;;  %1953 = vrcp.f32 %v1422_v5 }
 0x4aa   : > { %v1948_v7 = vpop.eup %1947 }
 0x4ab   : > { %v1950_v8 = vpop.eup %1949  ;;  %v1460_v50 = vmul.f32 %v1948_v7, %v2415_v34 }
 0x4ac   : > { %v1457_v0 = vmul.f32 %v1950_v8, %v2413_v15  ;;  %v1424_v10 = vpop.xlane.xlu1 %1423 }
 0x4ad   : > { %1476 = vst [vmem:[%s2219_s30 + $0x48] sm:$0xff] %v1460_v50  ;;  %1955 = vrcp.f32 %v1424_v10  ;;  %v1418_v44 = vpop.xlane.xlu0 %1417 }
 0x4ae   : > { %v1952_v60 = vpop.eup %1951  ;;  %1473 = vst [vmem:[%s2219_s30] sm:$0xff] %v1457_v0  ;;  %1957 = vrcp.f32 %v1418_v44 }
 0x4af   : > { %v1458_v11 = vmul.f32 %v1952_v60, %v2420_v6 }
 0x4b0   : > { %v1420_v13 = vpop.xlane.xlu1 %1419 }
 0x4b1   : > { %1474 = vst [vmem:[%s2219_s30 + $0x18] sm:$0xff] %v1458_v11  ;;  %1959 = vrcp.f32 %v1420_v13 }
 0x4b6   : > { %v1954_v14 = vpop.eup %1953 }
 0x4b7   : > { %v1463_v45 = vmul.f32 %v1954_v14, %v2424_v9 }
 0x4b8   : > { %v1430_v16 = vpop.xlane.xlu0 %1429 }
 0x4b9   : > { %1479 = vst [vmem:[%s2219_s30 + $0x90] sm:$0xff] %v1463_v45  ;;  %1961 = vrcp.f32 %v1430_v16 }
 0x4ba   : > { %v1956_v15 = vpop.eup %1955 }
 0x4bb   : > { %v1958_v17 = vpop.eup %1957  ;;  %v1464_v34 = vmul.f32 %v1956_v15, %v2429_v12 }
 0x4bc   : > { %v1461_v19 = vmul.f32 %v1958_v17, %v2431_v30  ;;  %v1432_v20 = vpop.xlane.xlu1 %1431 }
 0x4bd   : > { %1480 = vst [vmem:[%s2219_s30 + $0xa8] sm:$0xff] %v1464_v34  ;;  %1963 = vrcp.f32 %v1432_v20  ;;  %v1426_v21 = vpop.xlane.xlu0 %1425 }
 0x4be   : > { %v1960_v23 = vpop.eup %1959  ;;  %1477 = vst [vmem:[%s2219_s30 + $0x60] sm:$0xff] %v1461_v19  ;;  %1965 = vrcp.f32 %v1426_v21 }
 0x4bf   : > { %v1462_v6 = vmul.f32 %v1960_v23, %v2436_v41 }
 0x4c0   : > { %v1428_v24 = vpop.xlane.xlu1 %1427 }
 0x4c1   : > { %1478 = vst [vmem:[%s2219_s30 + $0x78] sm:$0xff] %v1462_v6  ;;  %1967 = vrcp.f32 %v1428_v24 }
 0x4c6   : > { %v1962_v25 = vpop.eup %1961 }
 0x4c7   : > { %v1467_v26 = vmul.f32 %v1962_v25, %v2439_v36 }
 0x4c9   : > { %1483 = vst [vmem:[%s2219_s30 + $0xf0] sm:$0xff] %v1467_v26 }
 0x4ca   : > { %v1964_v9 = vpop.eup %1963  ;;  %v1434_v27 = vpop.xlane.xlu0 %1433 }
 0x4cb   : > { %v1966_v18 = vpop.eup %1965  ;;  %v1468_v28 = vmul.f32 %v1964_v9, %v2443_v48  ;;  %1969 = vrcp.f32 %v1434_v27 }
 0x4cc   : > { %v1465_v35 = vmul.f32 %v1966_v18, %v2445_v51 }
 0x4cd   : > { %1484 = vst [vmem:[%s2219_s30 + $0x108] sm:$0xff] %v1468_v28 }
 0x4ce   : > { %v1968_v29 = vpop.eup %1967  ;;  %1481 = vst [vmem:[%s2219_s30 + $0xc0] sm:$0xff] %v1465_v35  ;;  %v1436_v12 = vpop.xlane.xlu1 %1435 }
 0x4cf   : > { %v1466_v30 = vmul.f32 %v1968_v29, %v2451_v55  ;;  %1971 = vrcp.f32 %v1436_v12  ;;  %v1438_v32 = vpop.xlane.xlu0 %1437 }
 0x4d0   : > { %1973 = vrcp.f32 %v1438_v32 }
 0x4d1   : > { %1482 = vst [vmem:[%s2219_s30 + $0xd8] sm:$0xff] %v1466_v30 }
 0x4d2   : > { %v1440_v33 = vpop.xlane.xlu1 %1439 }
 0x4d3   : > { %1975 = vrcp.f32 %v1440_v33 }
 0x4d8   : > { %v1970_v39 = vpop.eup %1969 }
 0x4d9   : > { %v1469_v40 = vmul.f32 %v1970_v39, %v2455_v59 }
 0x4db   : > { %1485 = vst [vmem:[%s2219_s30 + $0x120] sm:$0xff] %v1469_v40 }
 0x4dc   : > { %v1972_v41 = vpop.eup %1971 }
 0x4dd   : > { %v1974_v42 = vpop.eup %1973  ;;  %v1470_v36 = vmul.f32 %v1972_v41, %v2458_v61 }
 0x4de   : > { %v1471_v43 = vmul.f32 %v1974_v42, %v2460_v62 }
 0x4df   : > { %1486 = vst [vmem:[%s2219_s30 + $0x138] sm:$0xff] %v1470_v36 }
 0x4e0   : > { %v1976_v46 = vpop.eup %1975  ;;  %1487 = vst [vmem:[%s2219_s30 + $0x150] sm:$0xff] %v1471_v43 }
 0x4e1   : > { %v1472_v47 = vmul.f32 %v1976_v46, %v2464_v1 }
 0x4e3   : > { %1488 = vst [vmem:[%s2219_s30 + $0x168] sm:$0xff] %v1472_v47 }
 0x4e4 PF: > { %s20_s13 = sadd.s32 1, %s1983_s13  }
 0x4e5   : > { %p17_p4 = scmp.ge.s32.totalorder %s20_s13, 4  }
 0x4e7   :  { %19 = sbr.rel (!%p17_p4) target bundleno = 1 (0x1), region = 93 }

</bundles_post_ra>
